<compile_context>
chip_gen: v7x
topology: tpu7x:2x2x1
jax: 0.10.0
libtpu: 0.0.40
codegen_flags: <defaults>
</compile_context>

<pallas_src>
import functools

import jax
import jax.numpy as jnp
from jax import lax
from jax.experimental import pallas as pl
from jax.experimental.pallas import tpu as pltpu


def _band_weights_scaled(w, W, scale):
    """Fold the horizontal (kw) taps of a 3x3 HWIO conv weight, the left/right zero
    padding, and the per-output-channel BN scale into ONE wide matrix acting on a
    (rows, W*C) channel-interleaved slab.

    w:     (3, 3, C, C) float32 (HWIO)
    scale: (C,)         float32 (folded BN scale, applied to output channels)
    Returns (W*C, 3*W*C): the three kh bands concatenated along columns
    (column block kh*W*C.. is the band for vertical tap kh, dh = kh - 1).
    """
    C = w.shape[2]
    ws = w * scale.reshape(1, 1, 1, C)          # scale output channels
    cats = []
    for kh in range(3):
        m = jnp.zeros((W * C, W * C), jnp.float32)
        for kw in range(3):
            dw = kw - 1
            # nonzero block at (row block j, col block j') with j = j' + dw
            m = m + jnp.kron(jnp.eye(W, k=-dw, dtype=jnp.float32), ws[kh, kw])
        cats.append(m)
    return jnp.concatenate(cats, axis=1)        # (WC, 3*WC)


def _shift_mats(frames, H):
    """0/1 matrices implementing the vertical (kh) taps with zero padding at frame
    boundaries:  (S_up @ v)[i] = v[i-1]  (0 at the first row of each frame),
                 (S_dn @ v)[i] = v[i+1]  (0 at the last row of each frame)."""
    eye_f = jnp.eye(frames, dtype=jnp.float32)
    s_up = jnp.kron(eye_f, jnp.eye(H, k=-1, dtype=jnp.float32))
    s_dn = jnp.kron(eye_f, jnp.eye(H, k=1, dtype=jnp.float32))
    return jnp.stack([s_up, s_dn])              # (2, frames*H, frames*H)


def block_kernel(x_ref, sh_ref, w_ref, b_ref, out_ref):
    x = x_ref[...]                              # (rows, WC) f32, lane-dense
    s_up = sh_ref[0]                            # (rows, rows)
    s_dn = sh_ref[1]
    WC = x.shape[1]

    def conv_bn_relu(v, w, b):
        # one wide matmul: all three kh bands (BN scale already folded into w)
        t = jnp.dot(v, w, preferred_element_type=jnp.float32)          # (rows, 3*WC)
        # vertical taps via 0/1 shift matmuls on lane-aligned 128-wide slices
        acc = jnp.dot(s_up, t[:, :WC], preferred_element_type=jnp.float32)
        acc = acc + t[:, WC:2 * WC]
        acc = acc + jnp.dot(s_dn, t[:, 2 * WC:], preferred_element_type=jnp.float32)
        return jnp.maximum(acc + b, 0.0)

    h = conv_bn_relu(x, w_ref[0], b_ref[0])     # conv1 + bn1 + relu
    h = conv_bn_relu(h, w_ref[1], b_ref[1])     # conv2 + bn2 + relu
    # identity skip (identity_downsample is None -> plain residual) + final relu
    out_ref[...] = jnp.maximum(h + x, 0.0).astype(out_ref.dtype)


@functools.partial(jax.jit, static_argnames=())
def block3d_small(x, w1, s1, b1, w2, s2, b2):
    """x: (N, C, D, H, W) float32 -> (N, C, D, H, W) float32 (eval-mode folded BN)."""
    N, C, D, H, W = x.shape
    B = N * D                                   # independent 2-D frames
    WC = W * C
    BH = B * H

    # NCDHW -> (N, D, H, W, C) -> one lane-dense slab (B*H, W*C)
    xs = jnp.transpose(x, (0, 2, 3, 4, 1)).reshape(BH, WC).astype(jnp.float32)

    # fold horizontal taps + zero padding + BN scale into wide MXU weights
    wcat = jnp.stack([
        _band_weights_scaled(w1.astype(jnp.float32), W, s1.reshape(-1)),
        _band_weights_scaled(w2.astype(jnp.float32), W, s2.reshape(-1)),
    ])                                          # (2, WC, 3*WC)

    # folded BN biases tiled over the channel-interleaved lane axis
    bias = jnp.stack([
        jnp.tile(b1.reshape(-1), W).reshape(1, WC),
        jnp.tile(b2.reshape(-1), W).reshape(1, WC),
    ])                                          # (2, 1, WC)

    # <=2 grid steps, each a whole-frame chunk (no cross-step halo needed);
    # 2 "parallel" steps let v7x's two TensorCores split the work.
    chunks = 2 if (B % 2 == 0 and ((B // 2) * H) % 8 == 0) else 1
    frames_per_chunk = B // chunks
    rows = frames_per_chunk * H
    shift = _shift_mats(frames_per_chunk, H)    # (2, rows, rows)

    out = pl.pallas_call(
        block_kernel,
        out_shape=jax.ShapeDtypeStruct((BH, WC), jnp.float32),
        grid=(chunks,),
        in_specs=[
            pl.BlockSpec((rows, WC), lambda g: (g, 0)),           # input slab chunk
            pl.BlockSpec((2, rows, rows), lambda g: (0, 0, 0)),   # vertical shift mats
            pl.BlockSpec((2, WC, 3 * WC), lambda g: (0, 0, 0)),   # conv1/conv2 wide weights
            pl.BlockSpec((2, 1, WC), lambda g: (0, 0, 0)),        # bn1/bn2 folded biases
        ],
        out_specs=pl.BlockSpec((rows, WC), lambda g: (g, 0)),
        compiler_params=pltpu.CompilerParams(
            dimension_semantics=("parallel",)),
    )(xs, shift, wcat, bias)

    # (B*H, W*C) -> NCDHW
    return jnp.transpose(out.reshape(N, D, H, W, C), (0, 4, 1, 2, 3))


@jax.jit
def reference(x, w1, s1, b1, w2, s2, b2):
    """Pure-JAX reference with the same folded-BN semantics."""
    N, C, D, H, W = x.shape
    xf = jnp.transpose(x, (0, 2, 3, 4, 1)).reshape(N * D, H, W, C)

    def conv(v, w):
        return lax.conv_general_dilated(
            v, w, window_strides=(1, 1), padding=((1, 1), (1, 1)),
            dimension_numbers=('NHWC', 'HWIO', 'NHWC'))

    h = jnp.maximum(conv(xf, w1) * s1 + b1, 0.0)
    h = jnp.maximum(conv(h, w2) * s2 + b2, 0.0)
    y = jnp.maximum(h + xf, 0.0)
    return jnp.transpose(y.reshape(N, D, H, W, C), (0, 4, 1, 2, 3))


def make_params(key, C):
    ks = jax.random.split(key, 10)
    eps = 1e-5
    w1 = 0.1 * jax.random.normal(ks[0], (3, 3, C, C), jnp.float32)
    w2 = 0.1 * jax.random.normal(ks[1], (3, 3, C, C), jnp.float32)

    def bn(kg, kb, km, kv):
        gamma = 1.0 + 0.1 * jax.random.normal(kg, (C,), jnp.float32)
        beta = 0.1 * jax.random.normal(kb, (C,), jnp.float32)
        mean = 0.1 * jax.random.normal(km, (C,), jnp.float32)
        var = 1.0 + 0.1 * jax.random.uniform(kv, (C,), jnp.float32)
        scale = gamma / jnp.sqrt(var + eps)
        bias = beta - mean * scale
        return scale.reshape(1, C), bias.reshape(1, C)

    s1, b1 = bn(ks[2], ks[3], ks[4], ks[5])
    s2, b2 = bn(ks[6], ks[7], ks[8], ks[9])
    return w1, s1, b1, w2, s2, b2


if __name__ == "__main__":
    key = jax.random.PRNGKey(0)
    k_x, k_p = jax.random.split(key)

    # in_channels == out_channels (identity_downsample is None); W*C == 128 lanes.
    N, C, D, H, W = 2, 8, 4, 16, 16
    x = jax.random.normal(k_x, (N, C, D, H, W), jnp.float32)
    w1, s1, b1, w2, s2, b2 = make_params(k_p, C)

    out = block3d_small(x, w1, s1, b1, w2, s2, b2)
    out = jax.block_until_ready(out)

    ref = jax.block_until_ready(reference(x, w1, s1, b1, w2, s2, b2))
    assert out.shape == (N, C, D, H, W)
    assert jnp.allclose(out, ref, atol=1e-4, rtol=1e-4), \
        float(jnp.max(jnp.abs(out - ref)))

    print("KERNEL_OK")
</pallas_src>

<mosaic_0001>
module attributes {stable_mosaic.version = 11 : i64} {
  func.func @block_kernel(%arg0: i32, %arg1: memref<64x128xf32, #tpu.memory_space<vmem>>, %arg2: memref<2x64x64xf32, #tpu.memory_space<vmem>>, %arg3: memref<2x128x384xf32, #tpu.memory_space<vmem>>, %arg4: memref<2x1x128xf32, #tpu.memory_space<vmem>>, %arg5: memref<64x128xf32, #tpu.memory_space<vmem>>) attributes {dimension_semantics = [#tpu.dimension_semantics<parallel>], iteration_bounds = array<i64: 2>, scalar_prefetch = 0 : i64, scratch_operands = 0 : i64, tpu.core_type = #tpu.core_type<tc>, window_params = [{transform_indices = @transform_0, window_bounds = array<i64: 64, 128>}, {pipeline_mode = #tpu.pipeline_mode<synchronous>, transform_indices = @transform_1, window_bounds = array<i64: 2, 64, 64>}, {pipeline_mode = #tpu.pipeline_mode<synchronous>, transform_indices = @transform_2, window_bounds = array<i64: 2, 128, 384>}, {pipeline_mode = #tpu.pipeline_mode<synchronous>, transform_indices = @transform_3, window_bounds = array<i64: 2, 1, 128>}, {transform_indices = @transform_4, window_bounds = array<i64: 64, 128>}]} {
    %c0 = arith.constant 0 : index
    %c0_0 = arith.constant 0 : index
    %0 = vector.load %arg1[%c0, %c0_0] : memref<64x128xf32, #tpu.memory_space<vmem>>, vector<64x128xf32>
    %c0_1 = arith.constant 0 : index
    %c0_2 = arith.constant 0 : index
    %c0_3 = arith.constant 0 : index
    %1 = vector.load %arg2[%c0_1, %c0_2, %c0_3] : memref<2x64x64xf32, #tpu.memory_space<vmem>>, vector<1x64x64xf32>
    %2 = vector.shape_cast %1 : vector<1x64x64xf32> to vector<64x64xf32>
    %c1 = arith.constant 1 : index
    %c0_4 = arith.constant 0 : index
    %c0_5 = arith.constant 0 : index
    %3 = vector.load %arg2[%c1, %c0_4, %c0_5] : memref<2x64x64xf32, #tpu.memory_space<vmem>>, vector<1x64x64xf32>
    %4 = vector.shape_cast %3 : vector<1x64x64xf32> to vector<64x64xf32>
    %c0_6 = arith.constant 0 : index
    %c0_7 = arith.constant 0 : index
    %c0_8 = arith.constant 0 : index
    %5 = vector.load %arg3[%c0_6, %c0_7, %c0_8] : memref<2x128x384xf32, #tpu.memory_space<vmem>>, vector<1x128x384xf32>
    %6 = vector.shape_cast %5 : vector<1x128x384xf32> to vector<128x384xf32>
    %c0_9 = arith.constant 0 : index
    %c0_10 = arith.constant 0 : index
    %c0_11 = arith.constant 0 : index
    %7 = vector.load %arg4[%c0_9, %c0_10, %c0_11] : memref<2x1x128xf32, #tpu.memory_space<vmem>>, vector<1x1x128xf32>
    %8 = vector.shape_cast %7 : vector<1x1x128xf32> to vector<1x128xf32>
    %cst = arith.constant dense<0.000000e+00> : vector<64x384xf32>
    %9 = tpu.matmul %0, %6, %cst {dimension_numbers = #tpu.dot_dimension_numbers<[1], [0], [0], [1], [0, 0, 1, 1], [], []>} : vector<64x128xf32>, vector<128x384xf32>, vector<64x384xf32> -> vector<64x384xf32>
    %10 = vector.extract_strided_slice %9 {offsets = [0, 0], sizes = [64, 128], strides = [1, 1]} : vector<64x384xf32> to vector<64x128xf32>
    %cst_12 = arith.constant dense<0.000000e+00> : vector<64x128xf32>
    %11 = tpu.matmul %2, %10, %cst_12 {dimension_numbers = #tpu.dot_dimension_numbers<[1], [0], [0], [1], [0, 0, 1, 1], [], []>} : vector<64x64xf32>, vector<64x128xf32>, vector<64x128xf32> -> vector<64x128xf32>
    %12 = vector.extract_strided_slice %9 {offsets = [0, 128], sizes = [64, 128], strides = [1, 1]} : vector<64x384xf32> to vector<64x128xf32>
    %13 = arith.addf %11, %12 : vector<64x128xf32>
    %14 = vector.extract_strided_slice %9 {offsets = [0, 256], sizes = [64, 128], strides = [1, 1]} : vector<64x384xf32> to vector<64x128xf32>
    %cst_13 = arith.constant dense<0.000000e+00> : vector<64x128xf32>
    %15 = tpu.matmul %4, %14, %cst_13 {dimension_numbers = #tpu.dot_dimension_numbers<[1], [0], [0], [1], [0, 0, 1, 1], [], []>} : vector<64x64xf32>, vector<64x128xf32>, vector<64x128xf32> -> vector<64x128xf32>
    %16 = arith.addf %13, %15 : vector<64x128xf32>
    %17 = vector.broadcast %8 : vector<1x128xf32> to vector<64x128xf32>
    %18 = arith.addf %16, %17 : vector<64x128xf32>
    %cst_14 = arith.constant 0.000000e+00 : f32
    %19 = vector.broadcast %cst_14 : f32 to vector<64x128xf32>
    %20 = arith.maximumf %18, %19 : vector<64x128xf32>
    %c1_15 = arith.constant 1 : index
    %c0_16 = arith.constant 0 : index
    %c0_17 = arith.constant 0 : index
    %21 = vector.load %arg3[%c1_15, %c0_16, %c0_17] : memref<2x128x384xf32, #tpu.memory_space<vmem>>, vector<1x128x384xf32>
    %22 = vector.shape_cast %21 : vector<1x128x384xf32> to vector<128x384xf32>
    %c1_18 = arith.constant 1 : index
    %c0_19 = arith.constant 0 : index
    %c0_20 = arith.constant 0 : index
    %23 = vector.load %arg4[%c1_18, %c0_19, %c0_20] : memref<2x1x128xf32, #tpu.memory_space<vmem>>, vector<1x1x128xf32>
    %24 = vector.shape_cast %23 : vector<1x1x128xf32> to vector<1x128xf32>
    %cst_21 = arith.constant dense<0.000000e+00> : vector<64x384xf32>
    %25 = tpu.matmul %20, %22, %cst_21 {dimension_numbers = #tpu.dot_dimension_numbers<[1], [0], [0], [1], [0, 0, 1, 1], [], []>} : vector<64x128xf32>, vector<128x384xf32>, vector<64x384xf32> -> vector<64x384xf32>
    %26 = vector.extract_strided_slice %25 {offsets = [0, 0], sizes = [64, 128], strides = [1, 1]} : vector<64x384xf32> to vector<64x128xf32>
    %cst_22 = arith.constant dense<0.000000e+00> : vector<64x128xf32>
    %27 = tpu.matmul %2, %26, %cst_22 {dimension_numbers = #tpu.dot_dimension_numbers<[1], [0], [0], [1], [0, 0, 1, 1], [], []>} : vector<64x64xf32>, vector<64x128xf32>, vector<64x128xf32> -> vector<64x128xf32>
    %28 = vector.extract_strided_slice %25 {offsets = [0, 128], sizes = [64, 128], strides = [1, 1]} : vector<64x384xf32> to vector<64x128xf32>
    %29 = arith.addf %27, %28 : vector<64x128xf32>
    %30 = vector.extract_strided_slice %25 {offsets = [0, 256], sizes = [64, 128], strides = [1, 1]} : vector<64x384xf32> to vector<64x128xf32>
    %cst_23 = arith.constant dense<0.000000e+00> : vector<64x128xf32>
    %31 = tpu.matmul %4, %30, %cst_23 {dimension_numbers = #tpu.dot_dimension_numbers<[1], [0], [0], [1], [0, 0, 1, 1], [], []>} : vector<64x64xf32>, vector<64x128xf32>, vector<64x128xf32> -> vector<64x128xf32>
    %32 = arith.addf %29, %31 : vector<64x128xf32>
    %33 = vector.broadcast %24 : vector<1x128xf32> to vector<64x128xf32>
    %34 = arith.addf %32, %33 : vector<64x128xf32>
    %cst_24 = arith.constant 0.000000e+00 : f32
    %35 = vector.broadcast %cst_24 : f32 to vector<64x128xf32>
    %36 = arith.maximumf %34, %35 : vector<64x128xf32>
    %37 = arith.addf %36, %0 : vector<64x128xf32>
    %cst_25 = arith.constant 0.000000e+00 : f32
    %38 = vector.broadcast %cst_25 : f32 to vector<64x128xf32>
    %39 = arith.maximumf %37, %38 : vector<64x128xf32>
    %c0_26 = arith.constant 0 : index
    %c0_27 = arith.constant 0 : index
    %40 = vector.load %arg5[%c0_26, %c0_27] : memref<64x128xf32, #tpu.memory_space<vmem>>, vector<64x128xf32>
    tpu.vector_store %arg5[%c0_26, %c0_27], %39 {strides = array<i32>} : memref<64x128xf32, #tpu.memory_space<vmem>>, vector<64x128xf32>,
    return
  }
  func.func @transform_0(%arg0: i32) -> (i32, i32) {
    %c0_i32 = arith.constant 0 : i32
    %c0_i32_0 = arith.constant 0 : i32
    return %arg0, %c0_i32 : i32, i32
  }
  func.func @transform_1(%arg0: i32) -> (i32, i32, i32) {
    %c0_i32 = arith.constant 0 : i32
    %c0_i32_0 = arith.constant 0 : i32
    %c0_i32_1 = arith.constant 0 : i32
    %c0_i32_2 = arith.constant 0 : i32
    return %c0_i32, %c0_i32_0, %c0_i32_1 : i32, i32, i32
  }
  func.func @transform_2(%arg0: i32) -> (i32, i32, i32) {
    %c0_i32 = arith.constant 0 : i32
    %c0_i32_0 = arith.constant 0 : i32
    %c0_i32_1 = arith.constant 0 : i32
    %c0_i32_2 = arith.constant 0 : i32
    return %c0_i32, %c0_i32_0, %c0_i32_1 : i32, i32, i32
  }
  func.func @transform_3(%arg0: i32) -> (i32, i32, i32) {
    %c0_i32 = arith.constant 0 : i32
    %c0_i32_0 = arith.constant 0 : i32
    %c0_i32_1 = arith.constant 0 : i32
    %c0_i32_2 = arith.constant 0 : i32
    return %c0_i32, %c0_i32_0, %c0_i32_1 : i32, i32, i32
  }
  func.func @transform_4(%arg0: i32) -> (i32, i32) {
    %c0_i32 = arith.constant 0 : i32
    %c0_i32_0 = arith.constant 0 : i32
    return %arg0, %c0_i32 : i32, i32
  }
}

</mosaic_0001>

<bundles_post_ra>
// kernel: tile.10
= control target key start
LH: loop header
LB: loop body
LE: loop exit
PB: predicated region body
PF: predicated region fallthrough
CT: control target
= control target key end

     0   :  { %s28_s0 = inlined_call_operand.vmem [shape: f32[8], index: 0, kind: input, shape index: {}]   ;;  %s29_s1 = inlined_call_operand.vmem [shape: f32[16,8], index: 1, kind: output, shape index: {}]  }
   0x1   :  { %v4_v0 = vld [vmem:[%s28_s0] ss:$0 sm:$0xff] }
   0x2   :  { %5 = vst [vmem:[%s29_s1] sm:$0xff] %v4_v0  ;;  %8 = vst [vmem:[%s29_s1 + $0x8] sm:$0xff] %v4_v0 }

// kernel: tile.14
= control target key start
LH: loop header
LB: loop body
LE: loop exit
PB: predicated region body
PF: predicated region fallthrough
CT: control target
= control target key end

     0   :  { %s131_s10 = smov 120   ;;  %s132_s11 = smov 104   ;;  %vm3_vm0 = vcmask 64512   ;;  %vm9_vm1 = vcmask 1048512   ;;  %vm15_vm2 = vcmask 982912   ;;  %vm21_vm3 = vcmask 917312   ;;  %s207_s0 = inlined_call_operand.vmem [shape: f32[16,8], index: 0, kind: input, shape index: {}]   ;;  %s208_s1 = inlined_call_operand.vmem [shape: f32[1,1,128], index: 1, kind: output, shape index: {}]  }
   0x1   :  { %v101_v0 = vld [vmem:[%s207_s0 + $0xf] sm:$0x1]   ;;  %v103_v1 = vld [vmem:[%s207_s0 + $0xd] sm:$0x1]   ;;  %v102_v2 = vld [vmem:[%s207_s0 + $0xe] sm:$0x1]  }
   0x2   :  { %7 = vrot.lane.b32.xlu0 %v101_v0, %s131_s10  ;;  %19 = vrot.lane.b32.xlu1 %v103_v1, %s132_s11  ;;  %v104_v3 = vld [vmem:[%s207_s0 + $0xc] sm:$0x1]   ;;  %s133_s16 = smov 112   ;;  %s134_s17 = smov 96   ;;  %v105_v4 = vld [vmem:[%s207_s0 + $0xb] sm:$0x1]  }
   0x3   :  { %v106_v5 = vld [vmem:[%s207_s0 + $0xa] sm:$0x1]   ;;  %v2_v6 = vld [vmem:[%s207_s0] sm:$0x1]   ;;  %s135_s24 = smov 88   ;;  %s136_s25 = smov 80  }
   0x4   :  { %4 = vst.msk [vmem:[#allocation0] sm:$0x1] %vm3_vm0, %v2_v6   ;;  %v107_v7 = vld [vmem:[%s207_s0 + $0x9] sm:$0x1]   ;;  %v108_v8 = vld [vmem:[%s207_s0 + $0x8] sm:$0x1]  }
   0x5   :  { %s137_s30 = smov 72   ;;  %s138_s2 = smov 64   ;;  %v109_v9 = vld [vmem:[%s207_s0 + $0x7] sm:$0x1]   ;;  %v110_v10 = vld [vmem:[%s207_s0 + $0x6] sm:$0x1]  }
   0x6   :  { %13 = vrot.lane.b32.xlu0 %v102_v2, %s133_s16  ;;  %25 = vrot.lane.b32.xlu1 %v104_v3, %s134_s17  ;;  %s139_s7 = smov 56   ;;  %s140_s8 = smov 48   ;;  %v111_v11 = vld [vmem:[%s207_s0 + $0x5] sm:$0x1]   ;;  %v112_v12 = vld [vmem:[%s207_s0 + $0x4] sm:$0x1]  }
   0x7   :  { %s141_s13 = smov 40   ;;  %s142_s14 = smov 32   ;;  %v113_v13 = vld [vmem:[%s207_s0 + $0x3] sm:$0x1]   ;;  %v114_v14 = vld [vmem:[%s207_s0 + $0x2] sm:$0x1]  }
   0x8   :  { %s143_s19 = smov 24   ;;  %s144_s20 = smov 16   ;;  %v115_v15 = vld [vmem:[%s207_s0 + $0x1] sm:$0x1]   ;;  %vm27_vm4 = vcmask 851712   ;;  %vm33_vm5 = vcmask 786112  }
   0x9   :  { %s145_s0 = smov 8   ;;  %vm39_vm6 = vcmask 720512   ;;  %vm45_vm7 = vcmask 654912   ;;  %vm51_vm8 = vcmask 589312   ;;  %vm57_vm9 = vcmask 523712  }
   0xa   :  { %31 = vrot.lane.b32.xlu0 %v105_v4, %s135_s24  ;;  %37 = vrot.lane.b32.xlu1 %v106_v5, %s136_s25  ;;  %vm63_vm10 = vcmask 458112   ;;  %vm69_vm11 = vcmask 392512   ;;  %vm75_vm12 = vcmask 326912   ;;  %vm81_vm13 = vcmask 261312  }
   0xb   :  { %vm87_vm14 = vcmask 195712   ;;  %vm93_vm15 = vcmask 130112  }
   0xe   :  { %43 = vrot.lane.b32.xlu0 %v107_v7, %s137_s30  ;;  %49 = vrot.lane.b32.xlu1 %v108_v8, %s138_s2 }
  0x12   :  { %55 = vrot.lane.b32.xlu0 %v109_v9, %s139_s7  ;;  %61 = vrot.lane.b32.xlu1 %v110_v10, %s140_s8 }
  0x16   :  { %67 = vrot.lane.b32.xlu0 %v111_v11, %s141_s13  ;;  %73 = vrot.lane.b32.xlu1 %v112_v12, %s142_s14 }
  0x1a   :  { %79 = vrot.lane.b32.xlu0 %v113_v13, %s143_s19  ;;  %85 = vrot.lane.b32.xlu1 %v114_v14, %s144_s20 }
  0x1e   :  { %91 = vrot.lane.b32.xlu0 %v115_v15, %s145_s0 }
  0x74   :  { %v8_v16 = vpop.permute.xlu0 %7   ;;  %v20_v17 = vpop.permute.xlu1 %19  }
  0x75   :  { %10 = vst.msk [vmem:[#allocation0] sm:$0x1] %vm9_vm1, %v8_v16  }
  0x78   :  { %v14_v18 = vpop.permute.xlu0 %13   ;;  %v26_v19 = vpop.permute.xlu1 %25  }
  0x79   :  { %16 = vst.msk [vmem:[#allocation0] sm:$0x1] %vm15_vm2, %v14_v18  }
  0x7a   :  { %22 = vst.msk [vmem:[#allocation0] sm:$0x1] %vm21_vm3, %v20_v17  }
  0x7b   :  { %28 = vst.msk [vmem:[#allocation0] sm:$0x1] %vm27_vm4, %v26_v19  }
  0x7c   :  { %v32_v20 = vpop.permute.xlu0 %31   ;;  %v38_v21 = vpop.permute.xlu1 %37  }
  0x7d   :  { %34 = vst.msk [vmem:[#allocation0] sm:$0x1] %vm33_vm5, %v32_v20  }
  0x7e   :  { %40 = vst.msk [vmem:[#allocation0] sm:$0x1] %vm39_vm6, %v38_v21  }
  0x80   :  { %v44_v22 = vpop.permute.xlu0 %43   ;;  %v50_v23 = vpop.permute.xlu1 %49  }
  0x81   :  { %46 = vst.msk [vmem:[#allocation0] sm:$0x1] %vm45_vm7, %v44_v22  }
  0x82   :  { %52 = vst.msk [vmem:[#allocation0] sm:$0x1] %vm51_vm8, %v50_v23  }
  0x84   :  { %v56_v24 = vpop.permute.xlu0 %55   ;;  %v62_v25 = vpop.permute.xlu1 %61  }
  0x85   :  { %58 = vst.msk [vmem:[#allocation0] sm:$0x1] %vm57_vm9, %v56_v24  }
  0x86   :  { %64 = vst.msk [vmem:[#allocation0] sm:$0x1] %vm63_vm10, %v62_v25  }
  0x88   :  { %v68_v26 = vpop.permute.xlu0 %67   ;;  %v74_v27 = vpop.permute.xlu1 %73  }
  0x89   :  { %70 = vst.msk [vmem:[#allocation0] sm:$0x1] %vm69_vm11, %v68_v26  }
  0x8a   :  { %76 = vst.msk [vmem:[#allocation0] sm:$0x1] %vm75_vm12, %v74_v27  }
  0x8c   :  { %v80_v28 = vpop.permute.xlu0 %79   ;;  %v86_v29 = vpop.permute.xlu1 %85  }
  0x8d   :  { %82 = vst.msk [vmem:[#allocation0] sm:$0x1] %vm81_vm13, %v80_v28  }
  0x8e   :  { %88 = vst.msk [vmem:[#allocation0] sm:$0x1] %vm87_vm14, %v86_v29  }
  0x90   :  { %v92_v30 = vpop.permute.xlu0 %91  }
  0x91   :  { %94 = vst.msk [vmem:[#allocation0] sm:$0x1] %vm93_vm15, %v92_v30  }
  0x98   :  { %v98_v31 = vld [vmem:[#allocation0] sm:$0x1] }
  0x99   :  { %100 = vst [vmem:[%s208_s1] sm:$0x1] %v98_v31 }

// kernel: block3d_small.1
= control target key start
LH: loop header
LB: loop body
LE: loop exit
PB: predicated region body
PF: predicated region fallthrough
CT: control target
= control target key end

     0   :  { %s2020_s15 = smov 0   ;;  %s2600_s0 = inlined_call_operand.vmem [shape: f32[128,128], index: 0, kind: input, shape index: {}]   ;;  %s2601_s1 = inlined_call_operand.vmem [shape: f32[2,64,64], index: 1, kind: input, shape index: {}]   ;;  %s2602_s2 = inlined_call_operand.vmem [shape: f32[2,128,384], index: 2, kind: input, shape index: {}]   ;;  %s2603_s3 = inlined_call_operand.vmem [shape: f32[2,1,128], index: 3, kind: input, shape index: {}]   ;;  %s2604_s4 = inlined_call_operand.vmem [shape: f32[128,128], index: 4, kind: output, shape index: {}]  }
   0x1 LB: > { %s1371_s16 = sadd.s32 4294967295, %s1992_s15   ;;  %p1375_p0 = scmp.ge.s32.totalorder %s1992_s15, 1  ;;  %s1992_s15 = sphi %s2020_s15, %s14_s15  }
   0x2   : > { %p163_p1 = scmp.lt.s32.totalorder %s1992_s15, 3 }
   0x4   : > { %p164_p2 = pnand %p1375_p0, %p163_p1 }
   0x5   : > { %v227_v0 = vld [vmem:[%s2602_s2 + $0x8] sm:$0xff] (!%p164_p2)  ;;  %v230_v1 = vld [vmem:[%s2602_s2 + $0x20] sm:$0xff] (!%p164_p2)  ;;  %v228_v2 = vld [vmem:[%s2602_s2 + $0x10] sm:$0xff] (!%p164_p2)  ;;  %s2037_s23 = sshll.u32 (!%p164_p2), %s1371_s16, 3  ;;  %v1994_v7 = vmov (!%p164_p2), 0.0   ;;  %vm493_vm0 = vcmask (!%p164_p2), 523264  }
   0x6   : > { %167 = sbr.rel (%p164_p2) target bundleno = 991 (0x3df), region = 36  ;;  %v1785_v3 = vpack.c.bf16 (!%p164_p2), %v230_v1, %v227_v0  ;;  %v231_v4 = vld [vmem:[%s2602_s2 + $0x28] sm:$0xff] (!%p164_p2)  ;;  %v226_v5 = vld [vmem:[%s2602_s2] sm:$0xff] (!%p164_p2)  ;;  %v229_v6 = vld [vmem:[%s2602_s2 + $0x18] sm:$0xff] (!%p164_p2)  ;;  %339 = vmatprep.mubr.f32.mxu0 (!%p164_p2), %v1994_v7  ;;  %p190_p3 = scmp.lt.s32.totalorder (!%p164_p2), %s2037_s23, 15 }
   0x7   : > { %v1817_v8 = vpack.c.bf16 (!%p164_p2), %v231_v4, %v228_v2  ;;  %v1787_v9 = vpack.c.bf16 (!%p164_p2), %v229_v6, %v226_v5  ;;  %v233_v10 = vld [vmem:[%s2602_s2 + $0x38] sm:$0xff] (!%p164_p2)  ;;  %v236_v11 = vld [vmem:[%s2602_s2 + $0x50] sm:$0xff] (!%p164_p2)  ;;  %v234_v12 = vld [vmem:[%s2602_s2 + $0x40] sm:$0xff] (!%p164_p2) }
   0x8   : > { %1786 = vmatprep.subr.bf16.mxu0 (!%p164_p2), %v1785_v3  ;;  %v1789_v13 = vpack.c.bf16 (!%p164_p2), %v236_v11, %v233_v10  ;;  %v237_v14 = vld [vmem:[%s2602_s2 + $0x58] sm:$0xff] (!%p164_p2)  ;;  %v232_v15 = vld [vmem:[%s2602_s2 + $0x30] sm:$0xff] (!%p164_p2)  ;;  %v235_v16 = vld [vmem:[%s2602_s2 + $0x48] sm:$0xff] (!%p164_p2) }
   0x9   : > { %1818 = vmatprep.subr.bf16.mxu1 (!%p164_p2), %v1817_v8  ;;  %1788 = vmatpush1.bf16.msra.mxu0 (!%p164_p2), %v1787_v9  ;;  %v1821_v17 = vpack.c.bf16 (!%p164_p2), %v237_v14, %v234_v12  ;;  %v1791_v18 = vpack.c.bf16 (!%p164_p2), %v235_v16, %v232_v15  ;;  %v239_v19 = vld [vmem:[%s2602_s2 + $0x68] sm:$0xff] (!%p164_p2)  ;;  %v242_v20 = vld [vmem:[%s2602_s2 + $0x80] sm:$0xff] (!%p164_p2)  ;;  %v240_v21 = vld [vmem:[%s2602_s2 + $0x70] sm:$0xff] (!%p164_p2) }
   0xa   : > { %1820 = vmatpush3.bf16.msra.mxu1 (!%p164_p2), %v1817_v8  ;;  %1790 = vmatprep.subr.bf16.mxu0 (!%p164_p2), %v1789_v13  ;;  %v1793_v22 = vpack.c.bf16 (!%p164_p2), %v242_v20, %v239_v19  ;;  %v243_v23 = vld [vmem:[%s2602_s2 + $0x88] sm:$0xff] (!%p164_p2)  ;;  %v238_v24 = vld [vmem:[%s2602_s2 + $0x60] sm:$0xff] (!%p164_p2)  ;;  %v241_v25 = vld [vmem:[%s2602_s2 + $0x78] sm:$0xff] (!%p164_p2) }
   0xb   : > { %1822 = vmatprep.subr.bf16.mxu1 (!%p164_p2), %v1821_v17  ;;  %v1825_v26 = vpack.c.bf16 (!%p164_p2), %v243_v23, %v240_v21  ;;  %v245_v27 = vld [vmem:[%s2602_s2 + $0x98] sm:$0xff] (!%p164_p2)  ;;  %v248_v28 = vld [vmem:[%s2602_s2 + $0xb0] sm:$0xff] (!%p164_p2)  ;;  %v246_v29 = vld [vmem:[%s2602_s2 + $0xa0] sm:$0xff] (!%p164_p2)  ;;  %v1795_v31 = vpack.c.bf16 (!%p164_p2), %v241_v25, %v238_v24 }
   0xc   : > { %v249_v30 = vld [vmem:[%s2602_s2 + $0xb8] sm:$0xff] (!%p164_p2)  ;;  %v1797_v32 = vpack.c.bf16 (!%p164_p2), %v248_v28, %v245_v27  ;;  %v244_v33 = vld [vmem:[%s2602_s2 + $0x90] sm:$0xff] (!%p164_p2)  ;;  %v247_v34 = vld [vmem:[%s2602_s2 + $0xa8] sm:$0xff] (!%p164_p2) }
   0xd   : > { %s2606_s23 = smov (!%p190_p3, %s2037_s23), 15  ;;  %1792 = vmatpush1.bf16.msra.mxu0 %v1791_v18  ;;  %v1829_v35 = vpack.c.bf16 %v249_v30, %v246_v29  ;;  %v251_v36 = vld [vmem:[%s2602_s2 + $0xc8] sm:$0xff]  ;;  %v254_v37 = vld [vmem:[%s2602_s2 + $0xe0] sm:$0xff]  ;;  %v252_v38 = vld [vmem:[%s2602_s2 + $0xd0] sm:$0xff]  ;;  %v1799_v40 = vpack.c.bf16 %v247_v34, %v244_v33 }
   0xe   : > { %1824 = vmatpush3.bf16.msra.mxu1 %v1821_v17  ;;  %1794 = vmatprep.subr.bf16.mxu0 %v1793_v22  ;;  %v255_v39 = vld [vmem:[%s2602_s2 + $0xe8] sm:$0xff]  ;;  %s1377_s26 = sshll.u32 %s2606_s23, 3  ;;  %v1801_v41 = vpack.c.bf16 %v254_v37, %v251_v36  ;;  %v250_v42 = vld [vmem:[%s2602_s2 + $0xc0] sm:$0xff]  ;;  %v253_v43 = vld [vmem:[%s2602_s2 + $0xd8] sm:$0xff] }
   0xf   : > { %1826 = vmatprep.subr.bf16.mxu1 %v1825_v26  ;;  %v1833_v44 = vpack.c.bf16 %v255_v39, %v252_v38  ;;  %v257_v45 = vld [vmem:[%s2602_s2 + $0xf8] sm:$0xff]  ;;  %v260_v46 = vld [vmem:[%s2602_s2 + $0x110] sm:$0xff]  ;;  %s2139_s11 = scalar_lea.vmem %s2600_s0, %s1377_s26  ;;  %v258_v47 = vld [vmem:[%s2602_s2 + $0x100] sm:$0xff]  ;;  %v1803_v49 = vpack.c.bf16 %v253_v43, %v250_v42  ;;  %s2579_s19 = scalar_lea.vmem %s2604_s4, %s1377_s26 }
  0x10   : > { %v261_v48 = vld [vmem:[%s2602_s2 + $0x118] sm:$0xff]  ;;  %v1805_v50 = vpack.c.bf16 %v260_v46, %v257_v45  ;;  %v256_v51 = vld [vmem:[%s2602_s2 + $0xf0] sm:$0xff]  ;;  %v259_v52 = vld [vmem:[%s2602_s2 + $0x108] sm:$0xff] }
  0x11   : > { %1796 = vmatpush1.bf16.msra.mxu0 %v1795_v31  ;;  %v2154_v53 = vld [vmem:[%s2139_s11] sm:$0xff]  ;;  %v1837_v54 = vpack.c.bf16 %v261_v48, %v258_v47  ;;  %v263_v55 = vld [vmem:[%s2602_s2 + $0x128] sm:$0xff]  ;;  %v264_v57 = vld [vmem:[%s2602_s2 + $0x130] sm:$0xff]  ;;  %v1807_v59 = vpack.c.bf16 %v259_v52, %v256_v51 }
  0x12   : > { %1828 = vmatpush3.bf16.msra.mxu1 %v1825_v26  ;;  %1798 = vmatprep.subr.bf16.mxu0 %v1797_v32  ;;  %v266_v56 = vld [vmem:[%s2602_s2 + $0x140] sm:$0xff]  ;;  %v267_v58 = vld [vmem:[%s2602_s2 + $0x148] sm:$0xff]  ;;  %v265_v62 = vld [vmem:[%s2602_s2 + $0x138] sm:$0xff] }
  0x13   : > { %1830 = vmatprep.subr.bf16.mxu1 %v1829_v35  ;;  %1617 = vmatprep.mubr.f32.mxu1 %v2154_v53  ;;  %v1809_v60 = vpack.c.bf16 %v266_v56, %v263_v55  ;;  %v262_v61 = vld [vmem:[%s2602_s2 + $0x120] sm:$0xff]  ;;  %v1841_v63 = vpack.c.bf16 %v267_v58, %v264_v57  ;;  %v269_v0 = vld [vmem:[%s2602_s2 + $0x158] sm:$0xff]  ;;  %v272_v1 = vld [vmem:[%s2602_s2 + $0x170] sm:$0xff] }
  0x14   : > { %v270_v2 = vld [vmem:[%s2602_s2 + $0x160] sm:$0xff]  ;;  %v273_v3 = vld [vmem:[%s2602_s2 + $0x178] sm:$0xff]  ;;  %v1811_v4 = vpack.c.bf16 %v265_v62, %v262_v61  ;;  %v1813_v5 = vpack.c.bf16 %v272_v1, %v269_v0  ;;  %v268_v6 = vld [vmem:[%s2602_s2 + $0x150] sm:$0xff] }
  0x15   : > { %1800 = vmatpush1.bf16.msra.mxu0 %v1799_v40  ;;  %v271_v8 = vld [vmem:[%s2602_s2 + $0x168] sm:$0xff]  ;;  %v1845_v9 = vpack.c.bf16 %v273_v3, %v270_v2  ;;  %v2200_v12 = vld [vmem:[%s2139_s11 + $0x10] sm:$0xff]  ;;  %v2205_v13 = vld [vmem:[%s2139_s11 + $0x18] sm:$0xff] }
  0x16   : > { %1832 = vmatpush3.bf16.msra.mxu1 %v1829_v35  ;;  %1802 = vmatprep.subr.bf16.mxu0 %v1801_v41  ;;  %v1815_v10 = vpack.c.bf16 %v271_v8, %v268_v6  ;;  %v2195_v11 = vld [vmem:[%s2139_s11 + $0x8] sm:$0xff]  ;;  %v2210_v14 = vld [vmem:[%s2139_s11 + $0x20] sm:$0xff]  ;;  %v2220_v16 = vld [vmem:[%s2139_s11 + $0x30] sm:$0xff] }
  0x17   : > { %1834 = vmatprep.subr.bf16.mxu1 %v1833_v44  ;;  %v2215_v15 = vld [vmem:[%s2139_s11 + $0x28] sm:$0xff]  ;;  %v2224_v17 = vld [vmem:[%s2139_s11 + $0x38] sm:$0xff]  ;;  %v2239_v18 = vld [vmem:[%s2601_s1] sm:$0xff] }
  0x18   : > { %v2246_v19 = vld [vmem:[%s2601_s1 + $0x40] sm:$0xff]  ;;  %v1407_v37 = vld [vmem:[%s2602_s2 + $0x190] sm:$0xff]  ;;  %v1410_v38 = vld [vmem:[%s2602_s2 + $0x1a8] sm:$0xff] }
  0x19   : > { %1804 = vmatpush1.bf16.msra.mxu0 %v1803_v49  ;;  %v1413_v46 = vld [vmem:[%s2602_s2 + $0x1c0] sm:$0xff]  ;;  %v1416_v47 = vld [vmem:[%s2602_s2 + $0x1d8] sm:$0xff]  ;;  %v2275_v49 = vld [vmem:[%s2601_s1 + $0x48] sm:$0xff] }
  0x1a   : > { %1836 = vmatpush3.bf16.msra.mxu1 %v1833_v44  ;;  %1806 = vmatprep.subr.bf16.mxu0 %v1805_v50  ;;  %v1913_v44 = vpack.c.bf16 %v1410_v38, %v1407_v37  ;;  %v2280_v50 = vld [vmem:[%s2601_s1 + $0x50] sm:$0xff]  ;;  %v1917_v51 = vpack.c.bf16 %v1416_v47, %v1413_v46  ;;  %v1422_v55 = vld [vmem:[%s2602_s2 + $0x208] sm:$0xff]  ;;  %v2297_v58 = vld [vmem:[%s2601_s1 + $0x58] sm:$0xff] }
  0x1b   : > { %1838 = vmatprep.subr.bf16.mxu1 %v1837_v54  ;;  %v1425_v62 = vld [vmem:[%s2602_s2 + $0x220] sm:$0xff]  ;;  %v2319_v1 = vld [vmem:[%s2601_s1 + $0x68] sm:$0xff]  ;;  %v1431_v8 = vld [vmem:[%s2602_s2 + $0x250] sm:$0xff] }
  0x1c   : > { %v1406_v2 = vld [vmem:[%s2602_s2 + $0x188] sm:$0xff]  ;;  %v1409_v3 = vld [vmem:[%s2602_s2 + $0x1a0] sm:$0xff]  ;;  %v1411_v37 = vld [vmem:[%s2602_s2 + $0x1b0] sm:$0xff] }
  0x1d   : > { %1808 = vmatpush1.bf16.msra.mxu0 %v1807_v59  ;;  %v2302_v59 = vld [vmem:[%s2601_s1 + $0x60] sm:$0xff]  ;;  %v1414_v38 = vld [vmem:[%s2602_s2 + $0x1c8] sm:$0xff] }
  0x1e   : > { %1840 = vmatpush3.bf16.msra.mxu1 %v1837_v54  ;;  %1810 = vmatprep.subr.bf16.mxu0 %v1809_v60  ;;  %v1419_v54 = vld [vmem:[%s2602_s2 + $0x1f0] sm:$0xff]  ;;  %v1417_v47 = vld [vmem:[%s2602_s2 + $0x1e0] sm:$0xff] }
  0x1f   : > { %1842 = vmatprep.subr.bf16.mxu1 %v1841_v63  ;;  %v1921_v60 = vpack.c.bf16 %v1422_v55, %v1419_v54  ;;  %v1427_v54 = vld [vmem:[%s2602_s2 + $0x230] sm:$0xff]  ;;  %v2424_v55 = vld [vmem:[%s2601_s1 + $0x28] sm:$0xff] }
  0x21   : > { %1812 = vmatpush1.bf16.msra.mxu0 %v1811_v4  ;;  %v2330_v4 = vld [vmem:[%s2601_s1 + $0x70] sm:$0xff] }
  0x22   : > { %1844 = vmatpush3.bf16.msra.mxu1 %v1841_v63  ;;  %1814 = vmatprep.subr.bf16.mxu0 %v1813_v5  ;;  %v1428_v63 = vld [vmem:[%s2602_s2 + $0x238] sm:$0xff] }
  0x23   : > { %1846 = vmatprep.subr.bf16.mxu1 %v1845_v9  ;;  %v1925_v5 = vpack.c.bf16 %v1428_v63, %v1425_v62  ;;  %v1423_v62 = vld [vmem:[%s2602_s2 + $0x210] sm:$0xff]  ;;  %v1426_v63 = vld [vmem:[%s2602_s2 + $0x228] sm:$0xff] }
  0x25   : > { %1816 = vmatpush1.bf16.msra.mxu0 %v1815_v10 }
  0x26   : > { %1848 = vmatpush3.bf16.msra.mxu1 %v1845_v9  ;;  %v1434_v9 = vld [vmem:[%s2602_s2 + $0x268] sm:$0xff] }
  0x28   : > { %340 = vmatmul.mubr.f32.vlgmr.msra.gmra.mrb[0].mxu0 %v2154_v53 }
  0x29   : > { %1618 = vmatmul.mubr.f32.vlgmr.msra.gmra.mrb[0].mxu1 %v2195_v11  ;;  %345 = vmatprep.mubr.f32.mxu0 %v1994_v7 }
  0x2a   : > { %1620 = vmatprep.mubr.f32.mxu1 %v2200_v12 }
  0x2c   : > { %346 = vmatmul.mubr.f32.gmra.mrb[2].mxu0 %v2195_v11 }
  0x2d   : > { %351 = vmatprep.mubr.f32.mxu0 %v1994_v7  ;;  %1621 = vmatmul.mubr.f32.gmra.mrb[2].mxu1 %v2205_v13 }
  0x2e   : > { %1623 = vmatprep.mubr.f32.mxu1 %v2210_v14 }
  0x30   : > { %352 = vmatmul.mubr.f32.gmra.mrb[4].mxu0 %v2200_v12 }
  0x31   : > { %357 = vmatprep.mubr.f32.mxu0 %v1994_v7  ;;  %1624 = vmatmul.mubr.f32.gmra.mrb[4].mxu1 %v2215_v15 }
  0x32   : > { %1626 = vmatprep.mubr.f32.mxu1 %v2220_v16 }
  0x34   : > { %358 = vmatmul.mubr.f32.gmra.mrb[6].mxu0 %v2205_v13 }
  0x35   : > { %363 = vmatprep.mubr.f32.mxu0 %v1994_v7  ;;  %1627 = vmatmul.mubr.f32.gmra.mrb[6].mxu1 %v2224_v17 }
  0x36   : > { %1645 = vmatprep.mubr.msk.f32.mxu1 %vm493_vm0, %v2239_v18 }
  0x38   : > { %364 = vmatmul.mubr.f32.gmra.mrb[8].mxu0 %v2210_v14 }
  0x39   : > { %369 = vmatprep.mubr.f32.mxu0 %v1994_v7 }
  0x3c   : > { %370 = vmatmul.mubr.f32.gmra.mrb[10].mxu0 %v2215_v15 }
  0x3d   : > { %375 = vmatprep.mubr.f32.mxu0 %v1994_v7 }
  0x40   : > { %376 = vmatmul.mubr.f32.gmra.mrb[12].mxu0 %v2220_v16 }
  0x41   : > { %381 = vmatprep.mubr.f32.mxu0 %v1994_v7 }
  0x44   : > { %382 = vmatmul.mubr.f32.gmra.mrb[14].mxu0 %v2224_v17 }
  0x45   : > { %1673 = vmatprep.mubr.msk.f32.mxu0 %vm493_vm0, %v2246_v19 }
  0xfb   : > { %v341_v20 = vpop.f32.mrb[0].mxu0 }
  0xfc   : > { %v1619_v21 = vpop.f32.mrb[0].mxu1  ;;  %v2250_v22 = vpop.f32.mrb[1].mxu0 }
  0xfd   : > { %v454_v23 = vpop.f32.mrb[1].mxu1 }
  0xfe   : > { %v1865_v24 = vpack.c.bf16 %v1619_v21, %v454_v23  ;;  %v1881_v21 = vpack.c.bf16 %v1409_v3, %v1406_v2  ;;  %v1405_v23 = vld [vmem:[%s2602_s2 + $0x180] sm:$0xff]  ;;  %v1430_v2 = vld [vmem:[%s2602_s2 + $0x248] sm:$0xff] }
  0xff   : > { %v347_v25 = vpop.f32.mrb[2].mxu0  ;;  %v1433_v3 = vld [vmem:[%s2602_s2 + $0x260] sm:$0xff] }
 0x100   : > { %v1849_v26 = vpack.c.bf16 %v347_v25, %v341_v20  ;;  %1866 = vmatprep.subr.bf16.mxu0 %v1865_v24  ;;  %v2252_v27 = vpop.f32.mrb[3].mxu0  ;;  %v1622_v28 = vpop.f32.mrb[2].mxu1  ;;  %v2353_v25 = vld [vmem:[%s2601_s1 + $0x78] sm:$0xff] }
 0x101   : > { %1868 = vmatpush3.bf16.msra.mxu0 %v1865_v24  ;;  %v464_v29 = vpop.f32.mrb[3].mxu1  ;;  %v1408_v24 = vld [vmem:[%s2602_s2 + $0x198] sm:$0xff] }
 0x102   : > { %1850 = vmatprep.subr.bf16.mxu1 %v1849_v26  ;;  %v1869_v30 = vpack.c.bf16 %v1622_v28, %v464_v29  ;;  %v1415_v28 = vld [vmem:[%s2602_s2 + $0x1d0] sm:$0xff]  ;;  %v1929_v29 = vpack.c.bf16 %v1434_v9, %v1431_v8  ;;  %v1897_v8 = vpack.c.bf16 %v1433_v3, %v1430_v2  ;;  %v1429_v9 = vld [vmem:[%s2602_s2 + $0x240] sm:$0xff] }
 0x103   : > { %v353_v31 = vpop.f32.mrb[4].mxu0  ;;  %1852 = vmatpush3.bf16.msra.mxu1 %v1849_v26  ;;  %v1412_v26 = vld [vmem:[%s2602_s2 + $0x1b8] sm:$0xff] }
 0x104   : > { %v2254_v32 = vpop.f32.mrb[5].mxu0  ;;  %1870 = vmatprep.subr.bf16.mxu0 %v1869_v30  ;;  %v1625_v33 = vpop.f32.mrb[4].mxu1 }
 0x105   : > { %1872 = vmatpush3.bf16.msra.mxu0 %v1869_v30  ;;  %v474_v34 = vpop.f32.mrb[5].mxu1  ;;  %v2364_v30 = vld [vmem:[%s2601_s1 + $0x8] sm:$0xff] }
 0x106   : > { %v1873_v35 = vpack.c.bf16 %v1625_v33, %v474_v34  ;;  %v1437_v33 = vld [vmem:[%s2602_s2 + $0x280] sm:$0xff]  ;;  %v1440_v34 = vld [vmem:[%s2602_s2 + $0x298] sm:$0xff] }
 0x107   : > { %v359_v36 = vpop.f32.mrb[6].mxu0 }
 0x108   : > { %v1853_v39 = vpack.c.bf16 %v359_v36, %v353_v31  ;;  %v2262_v40 = vpop.f32.mrb[7].mxu0  ;;  %1874 = vmatprep.subr.bf16.mxu0 %v1873_v35  ;;  %v1628_v41 = vpop.f32.mrb[6].mxu1  ;;  %v1883_v31 = vpack.c.bf16 %v1408_v24, %v1405_v23  ;;  %v1885_v36 = vpack.c.bf16 %v1415_v28, %v1412_v26  ;;  %v1439_v23 = vld [vmem:[%s2602_s2 + $0x290] sm:$0xff] }
 0x109   : > { %1876 = vmatpush3.bf16.msra.mxu0 %v1873_v35  ;;  %v484_v42 = vpop.f32.mrb[7].mxu1  ;;  %v2375_v35 = vld [vmem:[%s2601_s1 + $0x10] sm:$0xff] }
 0x10a   : > { %1854 = vmatprep.subr.bf16.mxu1 %v1853_v39  ;;  %v1877_v43 = vpack.c.bf16 %v1628_v41, %v484_v42  ;;  %v1421_v41 = vld [vmem:[%s2602_s2 + $0x200] sm:$0xff]  ;;  %v1933_v42 = vpack.c.bf16 %v1440_v34, %v1437_v33  ;;  %v1435_v28 = vld [vmem:[%s2602_s2 + $0x270] sm:$0xff]  ;;  %v1442_v33 = vld [vmem:[%s2602_s2 + $0x2a8] sm:$0xff] }
 0x10b   : > { %v365_v45 = vpop.f32.mrb[8].mxu0  ;;  %1856 = vmatpush3.bf16.msra.mxu1 %v1853_v39  ;;  %v1418_v39 = vld [vmem:[%s2602_s2 + $0x1e8] sm:$0xff]  ;;  %v1445_v34 = vld [vmem:[%s2602_s2 + $0x2c0] sm:$0xff] }
 0x10c   : > { %v2270_v48 = vpop.f32.mrb[9].mxu0  ;;  %1878 = vmatprep.subr.bf16.mxu0 %v1877_v43  ;;  %v1889_v46 = vpack.c.bf16 %v1421_v41, %v1418_v39  ;;  %v1443_v39 = vld [vmem:[%s2602_s2 + $0x2b0] sm:$0xff] }
 0x10d   : > { %1880 = vmatpush3.bf16.msra.mxu0 %v1877_v43  ;;  %v2398_v43 = vld [vmem:[%s2601_s1 + $0x18] sm:$0xff] }
 0x10e   : > { %1914 = vmatprep.subr.bf16.mxu0 %v1913_v44 }
 0x10f   : > { %v371_v52 = vpop.f32.mrb[10].mxu0 }
 0x110   : > { %v1857_v56 = vpack.c.bf16 %v371_v52, %v365_v45  ;;  %v2288_v57 = vpop.f32.mrb[11].mxu0  ;;  %1674 = vmatmul.mubr.msk.f32.vlgmr.msra.gmra.mrb[16].mxu0 %vm493_vm0, %v2275_v49  ;;  %v2403_v45 = vld [vmem:[%s2601_s1 + $0x20] sm:$0xff]  ;;  %v1424_v52 = vld [vmem:[%s2602_s2 + $0x218] sm:$0xff] }
 0x111   : > { %1676 = vmatprep.mubr.msk.f32.mxu0 %vm493_vm0, %v2280_v50  ;;  %1916 = vmatpush3.bf16.msra.mxu0 %v1913_v44  ;;  %v1887_v44 = vpack.c.bf16 %v1414_v38, %v1411_v37  ;;  %v1441_v37 = vld [vmem:[%s2602_s2 + $0x2a0] sm:$0xff]  ;;  %v1444_v38 = vld [vmem:[%s2602_s2 + $0x2b8] sm:$0xff] }
 0x112   : > { %1858 = vmatprep.subr.bf16.mxu1 %v1857_v56  ;;  %1918 = vmatprep.subr.bf16.mxu0 %v1917_v51  ;;  %v1907_v41 = vpack.c.bf16 %v1444_v38, %v1441_v37 }
 0x113   : > { %v377_v61 = vpop.f32.mrb[12].mxu0  ;;  %1860 = vmatpush3.bf16.msra.mxu1 %v1857_v56 }
 0x114   : > { %v2310_v0 = vpop.f32.mrb[13].mxu0  ;;  %1677 = vmatmul.mubr.msk.f32.gmra.mrb[18].mxu0 %vm493_vm0, %v2297_v58 }
 0x115   : > { %1679 = vmatprep.mubr.msk.f32.mxu0 %vm493_vm0, %v2302_v59  ;;  %1920 = vmatpush3.bf16.msra.mxu0 %v1917_v51  ;;  %v1420_v51 = vld [vmem:[%s2602_s2 + $0x1f8] sm:$0xff] }
 0x116   : > { %1922 = vmatprep.subr.bf16.mxu0 %v1921_v60  ;;  %v1891_v56 = vpack.c.bf16 %v1420_v51, %v1417_v47  ;;  %v1451_v47 = vld [vmem:[%s2602_s2 + $0x2f0] sm:$0xff] }
 0x117   : > { %v383_v6 = vpop.f32.mrb[14].mxu0 }
 0x118   : > { %v1861_v10 = vpack.c.bf16 %v383_v6, %v377_v61  ;;  %v2338_v20 = vpop.f32.mrb[15].mxu0  ;;  %1680 = vmatmul.mubr.msk.f32.gmra.mrb[20].mxu0 %vm493_vm0, %v2319_v1  ;;  %v1893_v61 = vpack.c.bf16 %v1427_v54, %v1424_v52  ;;  %v1895_v6 = vpack.c.bf16 %v1426_v63, %v1423_v62  ;;  %v1447_v52 = vld [vmem:[%s2602_s2 + $0x2d0] sm:$0xff]  ;;  %v1450_v54 = vld [vmem:[%s2602_s2 + $0x2e8] sm:$0xff]  ;;  %v1452_v62 = vld [vmem:[%s2602_s2 + $0x2f8] sm:$0xff] }
 0x119   : > { %1682 = vmatprep.mubr.msk.f32.mxu0 %vm493_vm0, %v2330_v4  ;;  %1924 = vmatpush3.bf16.msra.mxu0 %v1921_v60  ;;  %v2429_v60 = vld [vmem:[%s2601_s1 + $0x30] sm:$0xff] }
 0x11a   : > { %1862 = vmatprep.subr.bf16.mxu1 %v1861_v10  ;;  %1926 = vmatprep.subr.bf16.mxu0 %v1925_v5 }
 0x11b   : > { %1864 = vmatpush3.bf16.msra.mxu1 %v1861_v10  ;;  %v1432_v10 = vld [vmem:[%s2602_s2 + $0x258] sm:$0xff] }
 0x11c   : > { %1683 = vmatmul.mubr.msk.f32.gmra.mrb[22].mxu0 %vm493_vm0, %v2353_v25  ;;  %1882 = vmatprep.subr.bf16.mxu1 %v1881_v21  ;;  %v1436_v21 = vld [vmem:[%s2602_s2 + $0x278] sm:$0xff]  ;;  %v1899_v24 = vpack.c.bf16 %v1432_v10, %v1429_v9 }
 0x11d   : > { %1928 = vmatpush3.bf16.msra.mxu0 %v1925_v5  ;;  %v2450_v5 = vld [vmem:[%s2601_s1 + $0x38] sm:$0xff]  ;;  %v1901_v26 = vpack.c.bf16 %v1439_v23, %v1436_v21 }
 0x11e   : > { %1646 = vmatmul.mubr.msk.f32.vlgmr.msra.gmra.mrb[8].mxu1 %vm493_vm0, %v2364_v30  ;;  %1930 = vmatprep.subr.bf16.mxu0 %v1929_v29 }
 0x11f   : > { %1648 = vmatprep.mubr.msk.f32.mxu1 %vm493_vm0, %v2375_v35  ;;  %1884 = vmatpush1.bf16.msra.mxu1 %v1883_v31 }
 0x120   : > { %1886 = vmatprep.subr.bf16.mxu1 %v1885_v36  ;;  %v1905_v36 = vpack.c.bf16 %v1445_v34, %v1442_v33 }
 0x121   : > { %1932 = vmatpush3.bf16.msra.mxu0 %v1929_v29  ;;  %v1438_v29 = vld [vmem:[%s2602_s2 + $0x288] sm:$0xff] }
 0x122   : > { %1649 = vmatmul.mubr.msk.f32.gmra.mrb[10].mxu1 %vm493_vm0, %v2398_v43  ;;  %1934 = vmatprep.subr.bf16.mxu0 %v1933_v42  ;;  %v1903_v31 = vpack.c.bf16 %v1438_v29, %v1435_v28 }
 0x123   : > { %1651 = vmatprep.mubr.msk.f32.mxu1 %vm493_vm0, %v2403_v45  ;;  %1888 = vmatpush1.bf16.msra.mxu1 %v1887_v44 }
 0x124   : > { %1890 = vmatprep.subr.bf16.mxu1 %v1889_v46  ;;  %v1448_v46 = vld [vmem:[%s2602_s2 + $0x2d8] sm:$0xff] }
 0x125   : > { %1936 = vmatpush3.bf16.msra.mxu0 %v1933_v42  ;;  %v1446_v42 = vld [vmem:[%s2602_s2 + $0x2c8] sm:$0xff]  ;;  %v1909_v51 = vpack.c.bf16 %v1451_v47, %v1448_v46 }
 0x126   : > { %1652 = vmatmul.mubr.msk.f32.gmra.mrb[12].mxu1 %vm493_vm0, %v2424_v55  ;;  %v1937_v44 = vpack.c.bf16 %v1446_v42, %v1443_v39 }
 0x127   : > { %1654 = vmatprep.mubr.msk.f32.mxu1 %vm493_vm0, %v2429_v60  ;;  %1892 = vmatpush1.bf16.msra.mxu1 %v1891_v56  ;;  %v1449_v56 = vld [vmem:[%s2602_s2 + $0x2e0] sm:$0xff] }
 0x128   : > { %1894 = vmatprep.subr.bf16.mxu1 %v1893_v61  ;;  %1938 = vmatprep.subr.bf16.mxu0 %v1937_v44  ;;  %v1911_v61 = vpack.c.bf16 %v1450_v54, %v1447_v52  ;;  %v1941_v63 = vpack.c.bf16 %v1452_v62, %v1449_v56 }
 0x129   : > { %1940 = vmatpush3.bf16.msra.mxu0 %v1937_v44 }
 0x12a   : > { %1655 = vmatmul.mubr.msk.f32.gmra.mrb[14].mxu1 %vm493_vm0, %v2450_v5  ;;  %1942 = vmatprep.subr.bf16.mxu0 %v1941_v63 }
 0x12b   : > { %1896 = vmatpush1.bf16.msra.mxu1 %v1895_v6  ;;  %897 = vmatprep.mubr.f32.mxu1 %v1994_v7 }
 0x12c   : > { %1898 = vmatprep.subr.bf16.mxu1 %v1897_v8 }
 0x12d   : > { %1944 = vmatpush3.bf16.msra.mxu0 %v1941_v63 }
 0x12f   : > { %1900 = vmatpush1.bf16.msra.mxu1 %v1899_v24 }
 0x130   : > { %1902 = vmatprep.subr.bf16.mxu1 %v1901_v26 }
 0x133   : > { %1904 = vmatpush1.bf16.msra.mxu1 %v1903_v31  ;;  %v1404_v31 = vld [vmem:[%s2603_s3] ss:$0 sm:$0xff] }
 0x134   : > { %1906 = vmatprep.subr.bf16.mxu1 %v1905_v36 }
 0x137   : > { %1908 = vmatpush1.bf16.msra.mxu1 %v1907_v41 }
 0x138   : > { %1910 = vmatprep.subr.bf16.mxu1 %v1909_v51 }
 0x13b   : > { %1912 = vmatpush1.bf16.msra.mxu1 %v1911_v61 }
 0x1e3   : > { %v1675_v2 = vpop.f32.mrb[16].mxu0 }
 0x1e4   : > { %v713_v3 = vpop.f32.mrb[17].mxu0 }
 0x1e7   : > { %v1678_v6 = vpop.f32.mrb[18].mxu0 }
 0x1e8   : > { %v723_v8 = vpop.f32.mrb[19].mxu0 }
 0x1eb   : > { %v1681_v9 = vpop.f32.mrb[20].mxu0 }
 0x1ec   : > { %v733_v10 = vpop.f32.mrb[21].mxu0 }
 0x1ef   : > { %v1684_v21 = vpop.f32.mrb[22].mxu0 }
 0x1f0   : > { %v743_v23 = vpop.f32.mrb[23].mxu0 }
 0x1f1   : > { %v1647_v24 = vpop.f32.mrb[8].mxu1 }
 0x1f2   : > { %v590_v26 = vadd.f32 %v1647_v24, %v2252_v27  ;;  %v584_v28 = vpop.f32.mrb[9].mxu1 }
 0x1f3   : > { %v585_v29 = vadd.f32 %v584_v28, %v2250_v22 }
 0x1f4   : > { %v753_v33 = vadd.f32 %v1675_v2, %v590_v26 }
 0x1f5   : > { %v752_v34 = vadd.f32 %v713_v3, %v585_v29  ;;  %v1650_v36 = vpop.f32.mrb[10].mxu1 }
 0x1f6   : > { %v767_v37 = vadd.f32 %v1404_v31, %v753_v33  ;;  %v600_v38 = vadd.f32 %v1650_v36, %v2262_v40  ;;  %v594_v39 = vpop.f32.mrb[11].mxu1 }
 0x1f7   : > { %v766_v41 = vadd.f32 %v1404_v31, %v752_v34  ;;  %v595_v42 = vadd.f32 %v594_v39, %v2254_v32 }
 0x1f8   : > { %v755_v44 = vadd.f32 %v1678_v6, %v600_v38  ;;  %v775_v51 = vmax.f32 %v767_v37, 0.0 }
 0x1f9   : > { %v774_v46 = vmax.f32 %v766_v41, 0.0  ;;  %v754_v27 = vadd.f32 %v723_v8, %v595_v42  ;;  %v1653_v47 = vpop.f32.mrb[12].mxu1 }
 0x1fa   : > { %v769_v22 = vadd.f32 %v1404_v31, %v755_v44  ;;  %v610_v52 = vadd.f32 %v1653_v47, %v2288_v57  ;;  %v604_v54 = vpop.f32.mrb[13].mxu1 }
 0x1fb   : > { %v768_v56 = vadd.f32 %v1404_v31, %v754_v27  ;;  %v605_v61 = vadd.f32 %v604_v54, %v2270_v48  ;;  %898 = vmatmul.mubr.f32.vlgmr.msra.gmra.mrb[16].mxu1 %v774_v46  ;;  %1717 = vmatprep.mubr.f32.mxu0 %v774_v46 }
 0x1fc   : > { %v757_v62 = vadd.f32 %v1681_v9, %v610_v52  ;;  %1718 = vmatmul.mubr.f32.vlgmr.msra.gmra.mrb[24].mxu0 %v775_v51  ;;  %903 = vmatprep.mubr.f32.mxu1 %v1994_v7  ;;  %v777_v2 = vmax.f32 %v769_v22, 0.0 }
 0x1fd   : > { %v776_v40 = vmax.f32 %v768_v56, 0.0  ;;  %v756_v32 = vadd.f32 %v733_v10, %v605_v61  ;;  %v1656_v63 = vpop.f32.mrb[14].mxu1 }
 0x1fe   : > { %v771_v3 = vadd.f32 %v1404_v31, %v757_v62  ;;  %v620_v6 = vadd.f32 %v1656_v63, %v2338_v20  ;;  %v614_v8 = vpop.f32.mrb[15].mxu1 }
 0x1ff   : > { %v770_v24 = vadd.f32 %v1404_v31, %v756_v32  ;;  %v615_v57 = vadd.f32 %v614_v8, %v2310_v0  ;;  %904 = vmatmul.mubr.f32.gmra.mrb[18].mxu1 %v775_v51  ;;  %1720 = vmatprep.mubr.f32.mxu0 %v776_v40 }
 0x200   : > { %v759_v48 = vadd.f32 %v1684_v21, %v620_v6  ;;  %1721 = vmatmul.mubr.f32.gmra.mrb[26].mxu0 %v777_v2  ;;  %909 = vmatprep.mubr.f32.mxu1 %v1994_v7  ;;  %v779_v28 = vmax.f32 %v771_v3, 0.0 }
 0x201   : > { %v778_v9 = vmax.f32 %v770_v24, 0.0  ;;  %v758_v26 = vadd.f32 %v743_v23, %v615_v57 }
 0x202   : > { %v773_v29 = vadd.f32 %v1404_v31, %v759_v48 }
 0x203   : > { %v772_v10 = vadd.f32 %v1404_v31, %v758_v26  ;;  %910 = vmatmul.mubr.f32.gmra.mrb[20].mxu1 %v776_v40  ;;  %1723 = vmatprep.mubr.f32.mxu0 %v778_v9 }
 0x204   : > { %1724 = vmatmul.mubr.f32.gmra.mrb[28].mxu0 %v779_v28  ;;  %915 = vmatprep.mubr.f32.mxu1 %v1994_v7  ;;  %v781_v33 = vmax.f32 %v773_v29, 0.0 }
 0x205   : > { %v780_v20 = vmax.f32 %v772_v10, 0.0 }
 0x207   : > { %916 = vmatmul.mubr.f32.gmra.mrb[22].mxu1 %v777_v2  ;;  %1726 = vmatprep.mubr.f32.mxu0 %v780_v20 }
 0x208   : > { %1727 = vmatmul.mubr.f32.gmra.mrb[30].mxu0 %v781_v33  ;;  %921 = vmatprep.mubr.f32.mxu1 %v1994_v7 }
 0x209   : > { %1745 = vmatprep.mubr.msk.f32.mxu0 %vm493_vm0, %v2239_v18 }
 0x20b   : > { %922 = vmatmul.mubr.f32.gmra.mrb[24].mxu1 %v778_v9 }
 0x20c   : > { %927 = vmatprep.mubr.f32.mxu1 %v1994_v7 }
 0x20f   : > { %928 = vmatmul.mubr.f32.gmra.mrb[26].mxu1 %v779_v28 }
 0x210   : > { %933 = vmatprep.mubr.f32.mxu1 %v1994_v7 }
 0x213   : > { %934 = vmatmul.mubr.f32.gmra.mrb[28].mxu1 %v780_v20 }
 0x214   : > { %939 = vmatprep.mubr.f32.mxu1 %v1994_v7 }
 0x217   : > { %940 = vmatmul.mubr.f32.gmra.mrb[30].mxu1 %v781_v33 }
 0x218   : > { %1773 = vmatprep.mubr.msk.f32.mxu1 %vm493_vm0, %v2246_v19 }
 0x2ce   : > { %v899_v0 = vpop.f32.mrb[16].mxu1 }
 0x2cf   : > { %v2531_v21 = vpop.f32.mrb[17].mxu1  ;;  %v1719_v23 = vpop.f32.mrb[24].mxu0 }
 0x2d0   : > { %v1012_v31 = vpop.f32.mrb[25].mxu0 }
 0x2d1   : > { %v1961_v34 = vpack.c.bf16 %v1719_v23, %v1012_v31 }
 0x2d2   : > { %v905_v18 = vpop.f32.mrb[18].mxu1 }
 0x2d3   : > { %v1945_v36 = vpack.c.bf16 %v905_v18, %v899_v0  ;;  %v2533_v37 = vpop.f32.mrb[19].mxu1  ;;  %v1722_v38 = vpop.f32.mrb[26].mxu0  ;;  %1962 = vmatprep.subr.bf16.mxu1 %v1961_v34 }
 0x2d4   : > { %v1022_v39 = vpop.f32.mrb[27].mxu0  ;;  %1964 = vmatpush3.bf16.msra.mxu1 %v1961_v34 }
 0x2d5   : > { %v1965_v41 = vpack.c.bf16 %v1722_v38, %v1022_v39  ;;  %1946 = vmatprep.subr.bf16.mxu0 %v1945_v36 }
 0x2d6   : > { %v911_v7 = vpop.f32.mrb[20].mxu1  ;;  %1948 = vmatpush3.bf16.msra.mxu0 %v1945_v36 }
 0x2d7   : > { %v2535_v42 = vpop.f32.mrb[21].mxu1  ;;  %v1725_v19 = vpop.f32.mrb[28].mxu0  ;;  %1966 = vmatprep.subr.bf16.mxu1 %v1965_v41 }
 0x2d8   : > { %v1032_v44 = vpop.f32.mrb[29].mxu0  ;;  %1968 = vmatpush3.bf16.msra.mxu1 %v1965_v41 }
 0x2d9   : > { %v1969_v46 = vpack.c.bf16 %v1725_v19, %v1032_v44 }
 0x2da   : > { %v917_v27 = vpop.f32.mrb[22].mxu1 }
 0x2db   : > { %v1949_v47 = vpack.c.bf16 %v917_v27, %v911_v7  ;;  %v919_v51 = vpop.f32.mrb[23].mxu1  ;;  %v1728_v22 = vpop.f32.mrb[30].mxu0  ;;  %1970 = vmatprep.subr.bf16.mxu1 %v1969_v46 }
 0x2dc   : > { %v1042_v52 = vpop.f32.mrb[31].mxu0  ;;  %1972 = vmatpush3.bf16.msra.mxu1 %v1969_v46 }
 0x2dd   : > { %v1973_v54 = vpack.c.bf16 %v1728_v22, %v1042_v52  ;;  %1950 = vmatprep.subr.bf16.mxu0 %v1949_v47 }
 0x2de   : > { %v923_v56 = vpop.f32.mrb[24].mxu1  ;;  %1952 = vmatpush3.bf16.msra.mxu0 %v1949_v47 }
 0x2df   : > { %v925_v61 = vpop.f32.mrb[25].mxu1  ;;  %1974 = vmatprep.subr.bf16.mxu1 %v1973_v54 }
 0x2e0   : > { %1976 = vmatpush3.bf16.msra.mxu1 %v1973_v54 }
 0x2e2   : > { %v929_v62 = vpop.f32.mrb[26].mxu1 }
 0x2e3   : > { %v1953_v40 = vpack.c.bf16 %v929_v62, %v923_v56  ;;  %v931_v32 = vpop.f32.mrb[27].mxu1  ;;  %1774 = vmatmul.mubr.msk.f32.vlgmr.msra.gmra.mrb[32].mxu1 %vm493_vm0, %v2275_v49 }
 0x2e4   : > { %1776 = vmatprep.mubr.msk.f32.mxu1 %vm493_vm0, %v2280_v50 }
 0x2e5   : > { %1954 = vmatprep.subr.bf16.mxu0 %v1953_v40 }
 0x2e6   : > { %v935_v63 = vpop.f32.mrb[28].mxu1  ;;  %1956 = vmatpush3.bf16.msra.mxu0 %v1953_v40 }
 0x2e7   : > { %v2541_v2 = vpop.f32.mrb[29].mxu1  ;;  %1777 = vmatmul.mubr.msk.f32.gmra.mrb[34].mxu1 %vm493_vm0, %v2297_v58 }
 0x2e8   : > { %1779 = vmatprep.mubr.msk.f32.mxu1 %vm493_vm0, %v2302_v59 }
 0x2ea   : > { %v941_v3 = vpop.f32.mrb[30].mxu1 }
 0x2eb   : > { %v1957_v6 = vpack.c.bf16 %v941_v3, %v935_v63  ;;  %v943_v8 = vpop.f32.mrb[31].mxu1  ;;  %1780 = vmatmul.mubr.msk.f32.gmra.mrb[36].mxu1 %vm493_vm0, %v2319_v1 }
 0x2ec   : > { %1782 = vmatprep.mubr.msk.f32.mxu1 %vm493_vm0, %v2330_v4 }
 0x2ed   : > { %1958 = vmatprep.subr.bf16.mxu0 %v1957_v6 }
 0x2ee   : > { %1960 = vmatpush3.bf16.msra.mxu0 %v1957_v6 }
 0x2ef   : > { %1783 = vmatmul.mubr.msk.f32.gmra.mrb[38].mxu1 %vm493_vm0, %v2353_v25 }
 0x2f1   : > { %1746 = vmatmul.mubr.msk.f32.vlgmr.msra.gmra.mrb[32].mxu0 %vm493_vm0, %v2364_v30 }
 0x2f2   : > { %1748 = vmatprep.mubr.msk.f32.mxu0 %vm493_vm0, %v2375_v35 }
 0x2f5   : > { %1749 = vmatmul.mubr.msk.f32.gmra.mrb[34].mxu0 %vm493_vm0, %v2398_v43 }
 0x2f6   : > { %1751 = vmatprep.mubr.msk.f32.mxu0 %vm493_vm0, %v2403_v45 }
 0x2f9   : > { %1752 = vmatmul.mubr.msk.f32.gmra.mrb[36].mxu0 %vm493_vm0, %v2424_v55 }
 0x2fa   : > { %1754 = vmatprep.mubr.msk.f32.mxu0 %vm493_vm0, %v2429_v60  ;;  %v1470_v60 = vld [vmem:[%s2603_s3 + $0x1] ss:$0 sm:$0xff] }
 0x2fd   : > { %1755 = vmatmul.mubr.msk.f32.gmra.mrb[38].mxu0 %vm493_vm0, %v2450_v5 }
 0x3b6   : > { %v1775_v49 = vpop.f32.mrb[32].mxu1 }
 0x3b7   : > { %v1222_v50 = vpop.f32.mrb[33].mxu1 }
 0x3ba   : > { %v1778_v58 = vpop.f32.mrb[34].mxu1 }
 0x3bb   : > { %v1232_v59 = vpop.f32.mrb[35].mxu1 }
 0x3be   : > { %v1781_v1 = vpop.f32.mrb[36].mxu1 }
 0x3bf   : > { %v1242_v4 = vpop.f32.mrb[37].mxu1 }
 0x3c2   : > { %v1784_v25 = vpop.f32.mrb[38].mxu1 }
 0x3c3   : > { %v1252_v30 = vpop.f32.mrb[39].mxu1 }
 0x3c4   : > { %v1747_v35 = vpop.f32.mrb[32].mxu0 }
 0x3c5   : > { %v1123_v43 = vadd.f32 %v1747_v35, %v2533_v37  ;;  %v1117_v45 = vpop.f32.mrb[33].mxu0 }
 0x3c6   : > { %v1118_v55 = vadd.f32 %v1117_v45, %v2531_v21 }
 0x3c7   : > { %v1262_v24 = vadd.f32 %v1775_v49, %v1123_v43 }
 0x3c8   : > { %v1261_v5 = vadd.f32 %v1222_v50, %v1118_v55  ;;  %v1750_v57 = vpop.f32.mrb[34].mxu0 }
 0x3c9   : > { %v1276_v48 = vadd.f32 %v1470_v60, %v1262_v24  ;;  %v1133_v9 = vadd.f32 %v1750_v57, %v919_v51  ;;  %v1127_v26 = vpop.f32.mrb[35].mxu0 }
 0x3ca   : > { %v1275_v28 = vadd.f32 %v1470_v60, %v1261_v5  ;;  %v1128_v29 = vadd.f32 %v1127_v26, %v2535_v42 }
 0x3cb   : > { %v1284_v10 = vmax.f32 %v1276_v48, 0.0  ;;  %v1264_v20 = vadd.f32 %v1778_v58, %v1133_v9 }
 0x3cc   : > { %v1283_v33 = vmax.f32 %v1275_v28, 0.0  ;;  %v1263_v0 = vadd.f32 %v1232_v59, %v1128_v29  ;;  %v1753_v23 = vpop.f32.mrb[36].mxu0 }
 0x3cd   : > { %v1292_v21 = vadd.f32 %v1284_v10, %v2195_v11  ;;  %v1278_v31 = vadd.f32 %v1470_v60, %v1264_v20  ;;  %v1143_v34 = vadd.f32 %v1753_v23, %v931_v32  ;;  %v1137_v18 = vpop.f32.mrb[37].mxu0 }
 0x3ce   : > { %v1291_v36 = vadd.f32 %v1283_v33, %v2154_v53  ;;  %v1277_v37 = vadd.f32 %v1470_v60, %v1263_v0  ;;  %v1138_v38 = vadd.f32 %v1137_v18, %v925_v61 }
 0x3cf   : > { %v1300_v39 = vmax.f32 %v1292_v21, 0.0  ;;  %v1286_v41 = vmax.f32 %v1278_v31, 0.0  ;;  %v1266_v7 = vadd.f32 %v1781_v1, %v1143_v34 }
 0x3d0   : > { %v1299_v42 = vmax.f32 %v1291_v36, 0.0  ;;  %v1285_v11 = vmax.f32 %v1277_v37, 0.0  ;;  %v1265_v19 = vadd.f32 %v1242_v4, %v1138_v38  ;;  %v1756_v44 = vpop.f32.mrb[38].mxu0 }
 0x3d1   : > { %1308 = vst [vmem:[%s2579_s19 + $0x8] sm:$0xff] %v1300_v39  ;;  %v1294_v46 = vadd.f32 %v1286_v41, %v2205_v13  ;;  %v1280_v27 = vadd.f32 %v1470_v60, %v1266_v7  ;;  %v1153_v47 = vadd.f32 %v1756_v44, %v943_v8  ;;  %v1147_v51 = vpop.f32.mrb[39].mxu0 }
 0x3d2   : > { %1307 = vst [vmem:[%s2579_s19] sm:$0xff] %v1299_v42  ;;  %v1293_v53 = vadd.f32 %v1285_v11, %v2200_v12  ;;  %v1279_v22 = vadd.f32 %v1470_v60, %v1265_v19  ;;  %v1148_v52 = vadd.f32 %v1147_v51, %v2541_v2 }
 0x3d3   : > { %v1302_v54 = vmax.f32 %v1294_v46, 0.0  ;;  %v1288_v56 = vmax.f32 %v1280_v27, 0.0  ;;  %v1268_v61 = vadd.f32 %v1784_v25, %v1153_v47 }
 0x3d4   : > { %v1301_v62 = vmax.f32 %v1293_v53, 0.0  ;;  %v1287_v40 = vmax.f32 %v1279_v22, 0.0  ;;  %v1267_v32 = vadd.f32 %v1252_v30, %v1148_v52 }
 0x3d5   : > { %1310 = vst [vmem:[%s2579_s19 + $0x18] sm:$0xff] %v1302_v54  ;;  %v1296_v13 = vadd.f32 %v1288_v56, %v2215_v15  ;;  %v1282_v63 = vadd.f32 %v1470_v60, %v1268_v61 }
 0x3d6   : > { %1309 = vst [vmem:[%s2579_s19 + $0x10] sm:$0xff] %v1301_v62  ;;  %v1295_v12 = vadd.f32 %v1287_v40, %v2210_v14  ;;  %v1281_v3 = vadd.f32 %v1470_v60, %v1267_v32 }
 0x3d7   : > { %v1304_v6 = vmax.f32 %v1296_v13, 0.0  ;;  %v1290_v2 = vmax.f32 %v1282_v63, 0.0 }
 0x3d8   : > { %v1303_v8 = vmax.f32 %v1295_v12, 0.0  ;;  %v1289_v49 = vmax.f32 %v1281_v3, 0.0 }
 0x3d9   : > { %1312 = vst [vmem:[%s2579_s19 + $0x28] sm:$0xff] %v1304_v6  ;;  %v1298_v50 = vadd.f32 %v1290_v2, %v2224_v17 }
 0x3da   : > { %1311 = vst [vmem:[%s2579_s19 + $0x20] sm:$0xff] %v1303_v8  ;;  %v1297_v58 = vadd.f32 %v1289_v49, %v2220_v16 }
 0x3db   : > { %v1306_v59 = vmax.f32 %v1298_v50, 0.0 }
 0x3dc   : > { %v1305_v1 = vmax.f32 %v1297_v58, 0.0 }
 0x3dd   : > { %1314 = vst [vmem:[%s2579_s19 + $0x38] sm:$0xff] %v1306_v59 }
 0x3de   : > { %1313 = vst [vmem:[%s2579_s19 + $0x30] sm:$0xff] %v1305_v1 }
 0x3df PF: > { %s14_s15 = sadd.s32 1, %s1992_s15  }
 0x3e0   : > { %p11_p4 = scmp.ge.s32.totalorder %s14_s15, 4  }
 0x3e2   :  { %13 = sbr.rel (!%p11_p4) target bundleno = 1 (0x1), region = 69 }

</bundles_post_ra>
